<compile_context>
chip_gen: v7x
topology: tpu7x:2x2x1
jax: 0.10.0
libtpu: 0.0.40
codegen_flags: <defaults>
</compile_context>

<pallas_src>
import jax
import jax.numpy as jnp
from jax.experimental import pallas as pl
from jax.experimental.pallas import tpu as pltpu


BN_EPS = 1e-5
OUT_DIM = 3
OUT_PAD = 8          # narrow padded output slab; real outputs live in columns [:3]
MAX_TB = 8192        # ceiling on the batch tile
VMEM_LIMIT_BYTES = 32 * 1024 * 1024   # explicit; safe on v5e/v6e (128 MiB) and v7x (64 MiB)


def _round_up(n, m):
    return ((n + m - 1) // m) * m


# ---------------------------------------------------------------------------
# Kernel: 4 chained matmuls, BN already folded into W2/W3, dropout = identity.
# Matmul operands follow the weight dtype (bf16 or f32); accumulation + epilogue f32.
# ---------------------------------------------------------------------------
def _mlp_kernel(x_ref,
                w1_ref, b1_ref,
                w2_ref, b2_ref,
                w3_ref, b3_ref,
                w4_ref, b4_ref,
                o_ref):
    # Linear(input_dim, h) + ReLU   (BN1 folded into W2/b2; Dropout = identity)
    h = jnp.dot(x_ref[...], w1_ref[...], preferred_element_type=jnp.float32)
    h = jnp.maximum(h + b1_ref[...], 0.0)

    # Linear(h, h/2) [BN1-folded] + ReLU   (BN2 folded into W3/b3; Dropout = identity)
    h = jnp.dot(h.astype(w2_ref.dtype), w2_ref[...],
                preferred_element_type=jnp.float32)
    h = jnp.maximum(h + b2_ref[...], 0.0)

    # Linear(h/2, h/4) [BN2-folded] + ReLU
    h = jnp.dot(h.astype(w3_ref.dtype), w3_ref[...],
                preferred_element_type=jnp.float32)
    h = jnp.maximum(h + b3_ref[...], 0.0)

    # Linear(h/4, 3), padded to OUT_PAD output columns (narrow f32 writeback)
    out = jnp.dot(h.astype(w4_ref.dtype), w4_ref[...],
                  preferred_element_type=jnp.float32) + b4_ref[...]
    o_ref[...] = out.astype(o_ref.dtype)


# ---------------------------------------------------------------------------
# Host-side parameter folding (BN -> following Linear, output padded to OUT_PAD).
# Call ONCE at weight-load time; pass the returned tuple to the forward.
# ---------------------------------------------------------------------------
def fold_params(params, *, use_bf16=True):
    s1 = params["bn1_gamma"] * jax.lax.rsqrt(params["bn1_var"] + BN_EPS)   # (1, h)
    t1 = params["bn1_beta"] - params["bn1_mean"] * s1
    s2 = params["bn2_gamma"] * jax.lax.rsqrt(params["bn2_var"] + BN_EPS)   # (1, h/2)
    t2 = params["bn2_beta"] - params["bn2_mean"] * s2

    w_dtype = jnp.bfloat16 if use_bf16 else jnp.float32

    w1 = params["w1"].astype(w_dtype)
    b1 = params["b1"]                                        # f32 epilogue

    w2 = (params["w2"] * s1.reshape(-1, 1)).astype(w_dtype)  # diag(scale1) @ W2
    b2 = params["b2"] + t1 @ params["w2"]                    # shift1 @ W2 + b2  (f32)
    w3 = (params["w3"] * s2.reshape(-1, 1)).astype(w_dtype)
    b3 = params["b3"] + t2 @ params["w3"]

    h4 = params["w4"].shape[0]
    w4 = jnp.zeros((h4, OUT_PAD), jnp.float32).at[:, :OUT_DIM].set(params["w4"])
    w4 = w4.astype(w_dtype)
    b4 = jnp.zeros((1, OUT_PAD), jnp.float32).at[:, :OUT_DIM].set(params["b4"])

    return (w1, b1, w2, b2, w3, b3, w4, b4)


# ---------------------------------------------------------------------------
# Wrapper: batch-tiled grid, weights resident, parallel batch axis.
# ---------------------------------------------------------------------------
def spatial_localization_forward(x, folded, *, block_b=2048):
    """Fused forward pass.

    x:      [B, input_dim] float32.
    folded: tuple from fold_params() (fold once at weight-load time).
    Returns [B, 3] float32.
    """
    B, D = x.shape
    w1, b1, w2, b2, w3, b3, w4, b4 = folded
    in_dtype = w1.dtype
    in_bytes = jnp.dtype(in_dtype).itemsize

    h1 = w1.shape[1]
    h2 = w2.shape[1]
    h3 = w3.shape[1]

    # Batch tile: multiple of 8 (sublane), capped so the grid has >= 2 steps
    # whenever the batch spans more than one minimal tile (v7x dual-TC sharding).
    TB_req = _round_up(max(block_b, 8), 8)
    TB_two_steps = _round_up(pl.cdiv(B, 2), 8)
    TB = max(8, min(TB_req, TB_two_steps, MAX_TB))
    B_pad = _round_up(B, TB)

    x_in = x.astype(in_dtype)
    if B_pad != B:
        x_in = jnp.pad(x_in, ((0, B_pad - B), (0, 0)))

    grid = (B_pad // TB,)

    # x / out stream per grid step; weights use constant index_maps -> VMEM-resident.
    in_specs = [pl.BlockSpec((TB, D), lambda i: (i, 0))]
    in_specs += [pl.BlockSpec(a.shape, lambda i: (0, 0)) for a in folded]
    out_specs = pl.BlockSpec((TB, OUT_PAD), lambda i: (i, 0))

    weight_bytes = int(sum(int(a.size) * a.dtype.itemsize for a in folded))
    flops = 2 * B_pad * (D * h1 + h1 * h2 + h2 * h3 + h3 * OUT_PAD)
    bytes_accessed = B_pad * (D * in_bytes + OUT_PAD * 4) + weight_bytes

    out = pl.pallas_call(
        _mlp_kernel,
        out_shape=jax.ShapeDtypeStruct((B_pad, OUT_PAD), jnp.float32),
        grid=grid,
        in_specs=in_specs,
        out_specs=out_specs,
        compiler_params=pltpu.CompilerParams(
            dimension_semantics=("parallel",),
            vmem_limit_bytes=VMEM_LIMIT_BYTES),
        cost_estimate=pl.CostEstimate(
            flops=int(flops),
            transcendentals=0,
            bytes_accessed=int(bytes_accessed)),
    )(x_in, *folded)

    return out[:B, :OUT_DIM]


# ---------------------------------------------------------------------------
# Deterministic parameter init mirroring the torch module's shapes.
# ---------------------------------------------------------------------------
def init_params(key, input_dim, hidden_dim=32):
    h, h2, h4 = hidden_dim, hidden_dim // 2, hidden_dim // 4
    ks = jax.random.split(key, 4)

    def lin(k, din, dout):
        w = jax.random.normal(k, (din, dout), jnp.float32) * 0.05
        b = jnp.full((1, dout), 0.01, jnp.float32)
        return w, b

    w1, b1 = lin(ks[0], input_dim, h)
    w2, b2 = lin(ks[1], h, h2)
    w3, b3 = lin(ks[2], h2, h4)
    w4, b4 = lin(ks[3], h4, OUT_DIM)

    return dict(
        w1=w1, b1=b1,
        bn1_gamma=jnp.ones((1, h), jnp.float32),
        bn1_beta=jnp.zeros((1, h), jnp.float32),
        bn1_mean=jnp.zeros((1, h), jnp.float32),
        bn1_var=jnp.ones((1, h), jnp.float32),
        w2=w2, b2=b2,
        bn2_gamma=jnp.ones((1, h2), jnp.float32),
        bn2_beta=jnp.zeros((1, h2), jnp.float32),
        bn2_mean=jnp.zeros((1, h2), jnp.float32),
        bn2_var=jnp.ones((1, h2), jnp.float32),
        w3=w3, b3=b3,
        w4=w4, b4=b4,
    )


def _reference_forward(x, p):
    """Pure-JAX reference (unfolded, eval-mode BN / identity dropout)."""
    h = jnp.maximum(x @ p["w1"] + p["b1"], 0.0)
    h = (h - p["bn1_mean"]) * (p["bn1_gamma"] / jnp.sqrt(p["bn1_var"] + BN_EPS)) + p["bn1_beta"]
    h = jnp.maximum(h @ p["w2"] + p["b2"], 0.0)
    h = (h - p["bn2_mean"]) * (p["bn2_gamma"] / jnp.sqrt(p["bn2_var"] + BN_EPS)) + p["bn2_beta"]
    h = jnp.maximum(h @ p["w3"] + p["b3"], 0.0)
    return h @ p["w4"] + p["b4"]


if __name__ == "__main__":
    key = jax.random.PRNGKey(0)
    kx, kp = jax.random.split(key)

    B, INPUT_DIM, HIDDEN = 20, 64, 32
    x = jax.random.normal(kx, (B, INPUT_DIM), jnp.float32)
    params = init_params(kp, INPUT_DIM, HIDDEN)
    ref = _reference_forward(x, params)

    # Fold once at "weight-load" time (outside the per-call forward path).
    folded_f32 = fold_params(params, use_bf16=False)
    folded_bf16 = fold_params(params, use_bf16=True)

    fwd = jax.jit(spatial_localization_forward, static_argnames=("block_b",))

    # f32 path with a small batch tile (exercises multi-step grid + batch padding).
    out_f32 = jax.block_until_ready(fwd(x, folded_f32, block_b=8))
    assert out_f32.shape == (B, OUT_DIM)
    assert jnp.allclose(out_f32, ref, atol=1e-5, rtol=1e-4)

    # bf16-operand path (default large batch tile; loose tolerance for the casts).
    out_bf16 = jax.block_until_ready(fwd(x, folded_bf16))
    assert out_bf16.shape == (B, OUT_DIM)
    assert jnp.allclose(out_bf16, ref, atol=2e-3, rtol=5e-2)

    print("KERNEL_OK")
</pallas_src>

<mosaic_0001>
module attributes {stable_mosaic.version = 11 : i64} {
  func.func @_mlp_kernel(%arg0: i32, %arg1: memref<8x64xf32, #tpu.memory_space<vmem>>, %arg2: memref<64x32xf32, #tpu.memory_space<vmem>>, %arg3: memref<1x32xf32, #tpu.memory_space<vmem>>, %arg4: memref<32x16xf32, #tpu.memory_space<vmem>>, %arg5: memref<1x16xf32, #tpu.memory_space<vmem>>, %arg6: memref<16x8xf32, #tpu.memory_space<vmem>>, %arg7: memref<1x8xf32, #tpu.memory_space<vmem>>, %arg8: memref<8x8xf32, #tpu.memory_space<vmem>>, %arg9: memref<1x8xf32, #tpu.memory_space<vmem>>, %arg10: memref<8x8xf32, #tpu.memory_space<vmem>>) attributes {dimension_semantics = [#tpu.dimension_semantics<parallel>], iteration_bounds = array<i64: 3>, scalar_prefetch = 0 : i64, scratch_operands = 0 : i64, tpu.core_type = #tpu.core_type<tc>, window_params = [{transform_indices = @transform_0, window_bounds = array<i64: 8, 64>}, {pipeline_mode = #tpu.pipeline_mode<synchronous>, transform_indices = @transform_1, window_bounds = array<i64: 64, 32>}, {pipeline_mode = #tpu.pipeline_mode<synchronous>, transform_indices = @transform_2, window_bounds = array<i64: 1, 32>}, {pipeline_mode = #tpu.pipeline_mode<synchronous>, transform_indices = @transform_3, window_bounds = array<i64: 32, 16>}, {pipeline_mode = #tpu.pipeline_mode<synchronous>, transform_indices = @transform_4, window_bounds = array<i64: 1, 16>}, {pipeline_mode = #tpu.pipeline_mode<synchronous>, transform_indices = @transform_5, window_bounds = array<i64: 16, 8>}, {pipeline_mode = #tpu.pipeline_mode<synchronous>, transform_indices = @transform_6, window_bounds = array<i64: 1, 8>}, {pipeline_mode = #tpu.pipeline_mode<synchronous>, transform_indices = @transform_7, window_bounds = array<i64: 8, 8>}, {pipeline_mode = #tpu.pipeline_mode<synchronous>, transform_indices = @transform_8, window_bounds = array<i64: 1, 8>}, {transform_indices = @transform_9, window_bounds = array<i64: 8, 8>}]} {
    %c0 = arith.constant 0 : index
    %c0_0 = arith.constant 0 : index
    %0 = vector.load %arg1[%c0, %c0_0] : memref<8x64xf32, #tpu.memory_space<vmem>>, vector<8x64xf32>
    %c0_1 = arith.constant 0 : index
    %c0_2 = arith.constant 0 : index
    %1 = vector.load %arg2[%c0_1, %c0_2] : memref<64x32xf32, #tpu.memory_space<vmem>>, vector<64x32xf32>
    %cst = arith.constant dense<0.000000e+00> : vector<8x32xf32>
    %2 = tpu.matmul %0, %1, %cst {dimension_numbers = #tpu.dot_dimension_numbers<[1], [0], [0], [1], [0, 0, 1, 1], [], []>} : vector<8x64xf32>, vector<64x32xf32>, vector<8x32xf32> -> vector<8x32xf32>
    %c0_3 = arith.constant 0 : index
    %c0_4 = arith.constant 0 : index
    %3 = vector.load %arg3[%c0_3, %c0_4] : memref<1x32xf32, #tpu.memory_space<vmem>>, vector<1x32xf32>
    %4 = vector.broadcast %3 : vector<1x32xf32> to vector<8x32xf32>
    %5 = arith.addf %2, %4 : vector<8x32xf32>
    %cst_5 = arith.constant 0.000000e+00 : f32
    %6 = vector.broadcast %cst_5 : f32 to vector<8x32xf32>
    %7 = arith.maximumf %5, %6 : vector<8x32xf32>
    %c0_6 = arith.constant 0 : index
    %c0_7 = arith.constant 0 : index
    %8 = vector.load %arg4[%c0_6, %c0_7] : memref<32x16xf32, #tpu.memory_space<vmem>>, vector<32x16xf32>
    %cst_8 = arith.constant dense<0.000000e+00> : vector<8x16xf32>
    %9 = tpu.matmul %7, %8, %cst_8 {dimension_numbers = #tpu.dot_dimension_numbers<[1], [0], [0], [1], [0, 0, 1, 1], [], []>} : vector<8x32xf32>, vector<32x16xf32>, vector<8x16xf32> -> vector<8x16xf32>
    %c0_9 = arith.constant 0 : index
    %c0_10 = arith.constant 0 : index
    %10 = vector.load %arg5[%c0_9, %c0_10] : memref<1x16xf32, #tpu.memory_space<vmem>>, vector<1x16xf32>
    %11 = vector.broadcast %10 : vector<1x16xf32> to vector<8x16xf32>
    %12 = arith.addf %9, %11 : vector<8x16xf32>
    %cst_11 = arith.constant 0.000000e+00 : f32
    %13 = vector.broadcast %cst_11 : f32 to vector<8x16xf32>
    %14 = arith.maximumf %12, %13 : vector<8x16xf32>
    %c0_12 = arith.constant 0 : index
    %c0_13 = arith.constant 0 : index
    %15 = vector.load %arg6[%c0_12, %c0_13] : memref<16x8xf32, #tpu.memory_space<vmem>>, vector<16x8xf32>
    %cst_14 = arith.constant dense<0.000000e+00> : vector<8x8xf32>
    %16 = tpu.matmul %14, %15, %cst_14 {dimension_numbers = #tpu.dot_dimension_numbers<[1], [0], [0], [1], [0, 0, 1, 1], [], []>} : vector<8x16xf32>, vector<16x8xf32>, vector<8x8xf32> -> vector<8x8xf32>
    %c0_15 = arith.constant 0 : index
    %c0_16 = arith.constant 0 : index
    %17 = vector.load %arg7[%c0_15, %c0_16] : memref<1x8xf32, #tpu.memory_space<vmem>>, vector<1x8xf32>
    %18 = vector.broadcast %17 : vector<1x8xf32> to vector<8x8xf32>
    %19 = arith.addf %16, %18 : vector<8x8xf32>
    %cst_17 = arith.constant 0.000000e+00 : f32
    %20 = vector.broadcast %cst_17 : f32 to vector<8x8xf32>
    %21 = arith.maximumf %19, %20 : vector<8x8xf32>
    %c0_18 = arith.constant 0 : index
    %c0_19 = arith.constant 0 : index
    %22 = vector.load %arg8[%c0_18, %c0_19] : memref<8x8xf32, #tpu.memory_space<vmem>>, vector<8x8xf32>
    %cst_20 = arith.constant dense<0.000000e+00> : vector<8x8xf32>
    %23 = tpu.matmul %21, %22, %cst_20 {dimension_numbers = #tpu.dot_dimension_numbers<[1], [0], [0], [1], [0, 0, 1, 1], [], []>} : vector<8x8xf32>, vector<8x8xf32>, vector<8x8xf32> -> vector<8x8xf32>
    %c0_21 = arith.constant 0 : index
    %c0_22 = arith.constant 0 : index
    %24 = vector.load %arg9[%c0_21, %c0_22] : memref<1x8xf32, #tpu.memory_space<vmem>>, vector<1x8xf32>
    %25 = vector.broadcast %24 : vector<1x8xf32> to vector<8x8xf32>
    %26 = arith.addf %23, %25 : vector<8x8xf32>
    %c0_23 = arith.constant 0 : index
    %c0_24 = arith.constant 0 : index
    %27 = vector.load %arg10[%c0_23, %c0_24] : memref<8x8xf32, #tpu.memory_space<vmem>>, vector<8x8xf32>
    tpu.vector_store %arg10[%c0_23, %c0_24], %26 {strides = array<i32>} : memref<8x8xf32, #tpu.memory_space<vmem>>, vector<8x8xf32>,
    return
  }
  func.func @transform_0(%arg0: i32) -> (i32, i32) {
    %c0_i32 = arith.constant 0 : i32
    %c0_i32_0 = arith.constant 0 : i32
    return %arg0, %c0_i32 : i32, i32
  }
  func.func @transform_1(%arg0: i32) -> (i32, i32) {
    %c0_i32 = arith.constant 0 : i32
    %c0_i32_0 = arith.constant 0 : i32
    %c0_i32_1 = arith.constant 0 : i32
    return %c0_i32, %c0_i32_0 : i32, i32
  }
  func.func @transform_2(%arg0: i32) -> (i32, i32) {
    %c0_i32 = arith.constant 0 : i32
    %c0_i32_0 = arith.constant 0 : i32
    %c0_i32_1 = arith.constant 0 : i32
    return %c0_i32, %c0_i32_0 : i32, i32
  }
  func.func @transform_3(%arg0: i32) -> (i32, i32) {
    %c0_i32 = arith.constant 0 : i32
    %c0_i32_0 = arith.constant 0 : i32
    %c0_i32_1 = arith.constant 0 : i32
    return %c0_i32, %c0_i32_0 : i32, i32
  }
  func.func @transform_4(%arg0: i32) -> (i32, i32) {
    %c0_i32 = arith.constant 0 : i32
    %c0_i32_0 = arith.constant 0 : i32
    %c0_i32_1 = arith.constant 0 : i32
    return %c0_i32, %c0_i32_0 : i32, i32
  }
  func.func @transform_5(%arg0: i32) -> (i32, i32) {
    %c0_i32 = arith.constant 0 : i32
    %c0_i32_0 = arith.constant 0 : i32
    %c0_i32_1 = arith.constant 0 : i32
    return %c0_i32, %c0_i32_0 : i32, i32
  }
  func.func @transform_6(%arg0: i32) -> (i32, i32) {
    %c0_i32 = arith.constant 0 : i32
    %c0_i32_0 = arith.constant 0 : i32
    %c0_i32_1 = arith.constant 0 : i32
    return %c0_i32, %c0_i32_0 : i32, i32
  }
  func.func @transform_7(%arg0: i32) -> (i32, i32) {
    %c0_i32 = arith.constant 0 : i32
    %c0_i32_0 = arith.constant 0 : i32
    %c0_i32_1 = arith.constant 0 : i32
    return %c0_i32, %c0_i32_0 : i32, i32
  }
  func.func @transform_8(%arg0: i32) -> (i32, i32) {
    %c0_i32 = arith.constant 0 : i32
    %c0_i32_0 = arith.constant 0 : i32
    %c0_i32_1 = arith.constant 0 : i32
    return %c0_i32, %c0_i32_0 : i32, i32
  }
  func.func @transform_9(%arg0: i32) -> (i32, i32) {
    %c0_i32 = arith.constant 0 : i32
    %c0_i32_0 = arith.constant 0 : i32
    return %arg0, %c0_i32 : i32, i32
  }
}

</mosaic_0001>

<bundles_post_ra>
// kernel: spatial_localization_forward.1
= control target key start
LH: loop header
LB: loop body
LE: loop exit
PB: predicated region body
PF: predicated region fallthrough
CT: control target
= control target key end

     0   :  { %s896_s30 = smov 0   ;;  %s981_s0 = inlined_call_operand.vmem [shape: f32[24,64], index: 0, kind: input, shape index: {}]   ;;  %s982_s1 = inlined_call_operand.vmem [shape: f32[64,32], index: 1, kind: input, shape index: {}]   ;;  %s983_s2 = inlined_call_operand.vmem [shape: f32[1,32], index: 2, kind: input, shape index: {}]   ;;  %s984_s3 = inlined_call_operand.vmem [shape: f32[32,16], index: 3, kind: input, shape index: {}]   ;;  %s985_s4 = inlined_call_operand.vmem [shape: f32[1,16], index: 4, kind: input, shape index: {}]   ;;  %s986_s5 = inlined_call_operand.vmem [shape: f32[16,8], index: 5, kind: input, shape index: {}]   ;;  %s987_s6 = inlined_call_operand.vmem [shape: f32[1,8], index: 6, kind: input, shape index: {}]   ;;  %s988_s7 = inlined_call_operand.vmem [shape: f32[8,8], index: 7, kind: input, shape index: {}]   ;;  %s989_s8 = inlined_call_operand.vmem [shape: f32[1,8], index: 8, kind: input, shape index: {}]   ;;  %s990_s9 = inlined_call_operand.vmem [shape: f32[24,8], index: 9, kind: output, shape index: {}]  }
   0x1 LB: > { %s725_s10 = sadd.s32 4294967295, %s841_s30   ;;  %p729_p0 = scmp.ge.s32.totalorder %s841_s30, 1  ;;  %s841_s30 = sphi %s896_s30, %s19_s30  }
   0x2   : > { %p286_p1 = scmp.lt.s32.totalorder %s841_s30, 4 }
   0x4   : > { %p287_p2 = pnand %p729_p0, %p286_p1 }
   0x5   : > { %v329_v0 = vld [vmem:[%s982_s1] sm:$0xff] (!%p287_p2)  ;;  %v330_v1 = vld [vmem:[%s982_s1 + $0x8] sm:$0xff] (!%p287_p2)  ;;  %v331_v2 = vld [vmem:[%s982_s1 + $0x10] sm:$0xff] (!%p287_p2)  ;;  %v843_v3 = vmov (!%p287_p2), 0.0|0.0   ;;  %vm844_vm0 = vmmov (!%p287_p2), 0   ;;  %v845_v6 = vmov (!%p287_p2), 0.0  }
   0x6   : > { %290 = sbr.rel (%p287_p2) target bundleno = 886 (0x376), region = 56  ;;  %803 = vmatprep.subr.bf16.mxu0 (!%p287_p2), %v843_v3  ;;  %v804_v4 = vpack.c.bf16 (!%p287_p2), %v330_v1, %v329_v0  ;;  %v332_v5 = vld [vmem:[%s982_s1 + $0x18] sm:$0xff] (!%p287_p2)  ;;  %777 = vmatprep.mubr.msk.f32.mxu0 (!%p287_p2), %vm844_vm0, %v845_v6  ;;  %p320_p3 = scmp.lt.s32.totalorder (!%p287_p2), %s725_s10, 2  ;;  %v419_v7 = vld [vmem:[%s984_s3] sm:$0xff] (!%p287_p2)  ;;  %v420_v9 = vld [vmem:[%s984_s3 + $0x8] sm:$0xff] (!%p287_p2)  ;;  %vm344_vm1 = vcmask (!%p287_p2), 523264  }
   0x7   : > { %815 = vmatprep.subr.bf16.mxu1 (!%p287_p2), %v843_v3  ;;  %788 = vmatprep.mubr.msk.f32.mxu1 (!%p287_p2), %vm844_vm0, %v845_v6  ;;  %v807_v8 = vpack.c.bf16 (!%p287_p2), %v332_v5, %v331_v2  ;;  %v333_v10 = vld [vmem:[%s982_s1 + $0x20] sm:$0xff] (!%p287_p2)  ;;  %v334_v11 = vld [vmem:[%s982_s1 + $0x28] sm:$0xff] (!%p287_p2)  ;;  %v816_v12 = vpack.c.bf16 (!%p287_p2), %v420_v9, %v419_v7  ;;  %v335_v14 = vld [vmem:[%s982_s1 + $0x30] sm:$0xff] (!%p287_p2)  ;;  %vm430_vm2 = vcmask (!%p287_p2), 261120   ;;  %vm514_vm3 = vcmask (!%p287_p2), 130048  }
   0x8   : > { %805 = vmatpush3.bf16.msra.mxu0 (!%p287_p2), %v804_v4  ;;  %v810_v13 = vpack.c.bf16 (!%p287_p2), %v334_v11, %v333_v10  ;;  %v336_v15 = vld [vmem:[%s982_s1 + $0x38] sm:$0xff] (!%p287_p2)  ;;  %v421_v18 = vld [vmem:[%s984_s3 + $0x10] sm:$0xff] (!%p287_p2)  ;;  %v732_v21 = vld [vmem:[%s983_s2] ss:$0 sm:$0xff] (!%p287_p2)  ;;  %vm597_vm4 = vcmask (!%p287_p2), 64512  }
   0x9   : > { %806 = vmatprep.subr.bf16.mxu0 (!%p287_p2), %v843_v3  ;;  %817 = vmatpush3.bf16.msra.mxu1 (!%p287_p2), %v816_v12  ;;  %v813_v16 = vpack.c.bf16 (!%p287_p2), %v336_v15, %v335_v14  ;;  %v422_v19 = vld [vmem:[%s984_s3 + $0x18] sm:$0xff] (!%p287_p2)  ;;  %v505_v26 = vld [vmem:[%s986_s5] sm:$0xff] (!%p287_p2)  ;;  %v506_v27 = vld [vmem:[%s986_s5 + $0x8] sm:$0xff] (!%p287_p2) }
   0xa   : > { %818 = vmatprep.subr.bf16.mxu1 (!%p287_p2), %v843_v3  ;;  %v819_v20 = vpack.c.bf16 (!%p287_p2), %v422_v19, %v421_v18  ;;  %v822_v28 = vpack.c.bf16 (!%p287_p2), %v506_v27, %v505_v26  ;;  %v734_v29 = vld [vmem:[%s985_s4] ss:$0 sm:$0xff] (!%p287_p2) }
   0xb   : > { %v589_v34 = vld [vmem:[%s988_s7] sm:$0xff] (!%p287_p2) }
   0xc   : > { %808 = vmatpush3.bf16.msra.mxu0 (!%p287_p2), %v807_v8  ;;  %v736_v35 = vld [vmem:[%s987_s6] ss:$0 sm:$0xff] (!%p287_p2) }
   0xd   : > { %s992_s10 = smov (!%p320_p3, %s725_s10), 2  ;;  %809 = vmatprep.subr.bf16.mxu0 %v843_v3  ;;  %820 = vmatpush3.bf16.msra.mxu1 %v819_v20  ;;  %v738_v40 = vld [vmem:[%s989_s8] ss:$0 sm:$0xff] }
   0xe   : > { %s730_s12 = sshll.u32 %s992_s10, 3  ;;  %821 = vmatprep.subr.bf16.mxu1 %v843_v3 }
   0xf   : > { %s323_s15 = scalar_lea.vmem %s981_s0, %s730_s12  ;;  %s327_s18 = scalar_lea.vmem %s990_s9, %s730_s12 }
  0x10   : > { %811 = vmatpush3.bf16.msra.mxu0 %v810_v13  ;;  %v328_v17 = vld [vmem:[%s323_s15] sm:$0xff] }
  0x11   : > { %812 = vmatprep.subr.bf16.mxu0 %v843_v3 }
  0x14   : > { %814 = vmatpush3.bf16.msra.mxu0 %v813_v16 }
  0x17   : > { %778 = vmatmul.mubr.msk.f32.vlgmr.msra.gmra.mrb[0].mxu0 %vm344_vm1, %v328_v17 }
  0xea   : > { %v414_v22 = vpop.f32.mrb[0].mxu0 }
  0xeb   : > { %v415_v23 = vadd.f32 %v732_v21, %v414_v22  ;;  %v779_v24 = vpop.f32.mrb[1].mxu0 }
  0xed   : > { %v418_v25 = vmax.f32 %v415_v23, 0.0 }
  0xef   : > { %789 = vmatmul.mubr.msk.f32.vlgmr.msra.gmra.mrb[0].mxu1 %vm430_vm2, %v418_v25 }
  0xf0   : > { %795 = vmatprep.mubr.msk.f32.mxu1 %vm844_vm0, %v845_v6  ;;  %823 = vmatpush3.bf16.msra.mxu1 %v822_v28 }
  0xf1   : > { %798 = vmatprep.subr.mxu1 %v845_v6 }
 0x1c2   : > { %v500_v30 = vpop.f32.mrb[0].mxu1 }
 0x1c3   : > { %v501_v31 = vadd.f32 %v734_v29, %v500_v30  ;;  %v790_v32 = vpop.f32.mrb[1].mxu1 }
 0x1c5   : > { %v504_v33 = vmax.f32 %v501_v31, 0.0 }
 0x1c7   : > { %796 = vmatmul.mubr.msk.f32.vlgmr.msra.gmra.mrb[2].mxu1 %vm514_vm3, %v504_v33 }
 0x1c8   : > { %800 = vmatprep.mubr.msk.f32.mxu1 %vm844_vm0, %v845_v6  ;;  %799 = vmatpush3.msra.mxu1 %v589_v34 }
 0x29a   : > { %v584_v36 = vpop.f32.mrb[2].mxu1 }
 0x29b   : > { %v585_v37 = vadd.f32 %v736_v35, %v584_v36  ;;  %v797_v38 = vpop.f32.mrb[3].mxu1 }
 0x29d   : > { %v588_v39 = vmax.f32 %v585_v37, 0.0 }
 0x29f   : > { %801 = vmatmul.mubr.msk.f32.vlgmr.msra.gmra.mrb[4].mxu1 %vm597_vm4, %v588_v39 }
 0x372   : > { %v667_v41 = vpop.f32.mrb[4].mxu1 }
 0x373   : > { %v668_v42 = vadd.f32 %v738_v40, %v667_v41  ;;  %v802_v43 = vpop.f32.mrb[5].mxu1 }
 0x375   : > { %671 = vst.msk [vmem:[%s327_s18] sm:$0xff] %vm597_vm4, %v668_v42 }
 0x376 PF: > { %s19_s30 = sadd.s32 1, %s841_s30  }
 0x377   : > { %p16_p4 = scmp.ge.s32.totalorder %s19_s30, 5  }
 0x379   :  { %18 = sbr.rel (!%p16_p4) target bundleno = 1 (0x1), region = 86 }

</bundles_post_ra>
